<compile_context>
chip_gen: v7x
topology: tpu7x:2x2x1
jax: 0.10.0
libtpu: 0.0.40
codegen_flags: <defaults>
</compile_context>

<pallas_src>
import math
from functools import partial

import jax
import jax.numpy as jnp
from jax.experimental import pallas as pl
from jax.experimental.pallas import tpu as pltpu


# ----------------------------------------------------------------------------
# Pallas kernel: tiled patch-embedding matmul + fused (bias + pos + cls) add
# ----------------------------------------------------------------------------
def _patch_embed_kernel(x_ref, w_ref, pos_ref, o_ref):
    # x_ref:   (1, TM, K_pad)  compute dtype (bf16 in production)
    # w_ref:   (K_pad, TN)     compute dtype
    # pos_ref: (TM, TN)        compute dtype (conv bias + position emb; cls row 0)
    # o_ref:   (1, TM, TN)     compute dtype
    acc = jnp.dot(x_ref[0], w_ref[...], preferred_element_type=jnp.float32)
    o_ref[0] = (acc + pos_ref[...].astype(jnp.float32)).astype(o_ref.dtype)


# ----------------------------------------------------------------------------
# PyTorch-compatible bicubic interpolation (align_corners=False, A=-0.75)
# ----------------------------------------------------------------------------
def _cubic_weights(t, A=-0.75):
    def k(x):
        ax = jnp.abs(x)
        return jnp.where(
            ax <= 1.0,
            (A + 2.0) * ax**3 - (A + 3.0) * ax**2 + 1.0,
            jnp.where(ax < 2.0,
                      A * ax**3 - 5.0 * A * ax**2 + 8.0 * A * ax - 4.0 * A,
                      0.0),
        )
    return jnp.stack([k(t + 1.0), k(t), k(1.0 - t), k(2.0 - t)], axis=-1)


def _resize_axis_bicubic(x, out_size, axis):
    in_size = x.shape[axis]
    scale = in_size / out_size
    real = (jnp.arange(out_size, dtype=jnp.float32) + 0.5) * scale - 0.5
    idx0 = jnp.floor(real)
    t = real - idx0
    w = _cubic_weights(t)                                         # (out, 4)
    taps = idx0[:, None] + jnp.arange(-1.0, 3.0)[None, :]
    taps = jnp.clip(taps, 0, in_size - 1).astype(jnp.int32)       # (out, 4)
    g = jnp.take(x, taps, axis=axis)   # x[:axis] + (out, 4) + x[axis+1:]
    w_shape = [1] * g.ndim
    w_shape[axis] = out_size
    w_shape[axis + 1] = 4
    return jnp.sum(g * w.reshape(w_shape), axis=axis + 1)


def _get_pos_embed(pos_patch, h, w, src_grid):
    # pos_patch: (1, src_grid*src_grid, D) -> (h*w, D), float32
    d = pos_patch.shape[-1]
    p = pos_patch.astype(jnp.float32).reshape(src_grid, src_grid, d)
    p = _resize_axis_bicubic(p, h, axis=0)
    p = _resize_axis_bicubic(p, w, axis=1)
    return p.reshape(h * w, d)


def _round_up(x, m):
    return ((x + m - 1) // m) * m


# ----------------------------------------------------------------------------
# Forward wrapper
# ----------------------------------------------------------------------------
def intern_vision_embeddings(pixel_values, params, *, patch_size,
                             tile_m=256, tile_n=None,
                             vmem_budget=20 << 20):
    """InternVisionEmbeddings forward.

    tile_m caps the sequence tile; tile_n (default: full hidden dim when it
    fits the VMEM budget) tiles the hidden dim.  Defaults suit v5e/v6e/v7x.
    """
    w = params["patch_w"]                   # (D, 3, P, P)
    b = params["patch_b"]                   # (D,)
    cls_emb = params["class_embedding"]     # (1, 1, D)
    pos_emb = params["position_embedding"]  # (1, num_positions, D)

    B, C, H, W = pixel_values.shape
    P = patch_size
    assert H % P == 0 and W % P == 0, "image size must be divisible by patch_size"
    Hp, Wp = H // P, W // P
    N = Hp * Wp
    S = N + 1
    D = w.shape[0]
    K = C * P * P
    K_pad = _round_up(K, 128)               # lane-align the contraction dim only
    src_grid = int(round(math.sqrt(pos_emb.shape[1] - 1)))
    assert src_grid * src_grid == pos_emb.shape[1] - 1, "pos grid must be square"

    # Compute/output dtype follows the parameter dtype (PyTorch target_dtype),
    # NOT pixel_values.dtype (pixels may arrive as f32).
    compute_dtype = w.dtype
    esize = jnp.dtype(compute_dtype).itemsize

    # im2col with the compute-dtype cast fused into the same pass:
    # (B,C,Hp,P,Wp,P) -> (B,Hp,Wp,C,P,P) -> (B,N,K); then prepend the zero
    # class-token row and zero-pad K -> K_pad.
    x = pixel_values.reshape(B, C, Hp, P, Wp, P)
    x = x.transpose(0, 2, 4, 1, 3, 5).astype(compute_dtype).reshape(B, N, K)
    x = jnp.pad(x, ((0, 0), (1, 0), (0, K_pad - K)))              # (B, S, K_pad)

    # Conv weight as a (K_pad, D) matmul operand in the compute dtype.
    w_mat = jnp.pad(w.reshape(D, K).T.astype(compute_dtype),
                    ((0, K_pad - K), (0, 0)))                      # (K_pad, D)

    # Fused additive table, built in f32, streamed in the compute dtype:
    #   row 0      = class_embedding + cls position embedding
    #   rows 1..N  = resized patch position embedding + conv bias
    pos_patch = _get_pos_embed(pos_emb[:, 1:, :], Hp, Wp, src_grid)      # (N, D)
    cls_row = (cls_emb[0, 0, :].astype(jnp.float32)
               + pos_emb[0, 0, :].astype(jnp.float32))[None, :]          # (1, D)
    pos_ext = jnp.concatenate(
        [cls_row, pos_patch + b.astype(jnp.float32)[None, :]], axis=0)
    pos_ext = pos_ext.astype(compute_dtype)                              # (S, D)

    # ---------------- tile selection ----------------
    # Sequence: spread the S = N+1 remainder evenly so no tile is near-empty.
    if S <= tile_m:
        TM = S
    else:
        n_i0 = pl.cdiv(S, tile_m)
        TM = _round_up(pl.cdiv(S, n_i0), 8)
    n_i = pl.cdiv(S, TM)

    # Hidden dim: prefer the full D (single j tile => each operand read once,
    # lane-dense stores); shrink only if the working set overflows the budget.
    def ws_bytes(tm, tn):
        # double-buffered x / pos / out tiles + (double-buffered) resident W
        return 2 * esize * (tm * K_pad + 2 * tm * tn + K_pad * tn)

    if tile_n is None:
        TN = D
    else:
        TN = min(_round_up(min(tile_n, D), 128), D) if D >= 128 else D
    while TN > 128 and ws_bytes(TM, TN) > vmem_budget:
        TN = max(128, _round_up(TN // 2, 128))
    n_j = pl.cdiv(D, TN)

    # v7x has 2 TensorCores: keep >= 2 parallel grid steps when the work is
    # big enough to matter (production: B >= 1, n_i = 5 already satisfies it).
    if B == 1 and n_i == 1 and n_j == 1 and S >= 256:
        TM = _round_up(pl.cdiv(S, 2), 8)
        n_i = pl.cdiv(S, TM)

    # Grid (j, i, b): b innermost so x / pos / out blocks change per step while
    # W's block index only changes with j -> W is DMA'd exactly once overall
    # (and with the default n_j == 1 so are x and pos).
    grid = (n_j, n_i, B)

    vmem_limit = min(max(32 << 20, 2 * ws_bytes(TM, TN)), 48 << 20)

    return pl.pallas_call(
        _patch_embed_kernel,
        out_shape=jax.ShapeDtypeStruct((B, S, D), compute_dtype),
        grid_spec=pltpu.PrefetchScalarGridSpec(
            num_scalar_prefetch=0,
            grid=grid,
            in_specs=[
                pl.BlockSpec((1, TM, K_pad), lambda j, i, bi: (bi, i, 0)),
                pl.BlockSpec((K_pad, TN),    lambda j, i, bi: (0, j)),
                pl.BlockSpec((TM, TN),       lambda j, i, bi: (i, j)),
            ],
            out_specs=pl.BlockSpec((1, TM, TN), lambda j, i, bi: (bi, i, j)),
        ),
        compiler_params=pltpu.CompilerParams(
            dimension_semantics=("parallel", "parallel", "parallel"),
            vmem_limit_bytes=vmem_limit),
    )(x, w_mat, pos_ext)


# ----------------------------------------------------------------------------
# Plain-JAX reference (mirrors the PyTorch forward) for verification
# ----------------------------------------------------------------------------
def reference_forward(pixel_values, params, *, patch_size):
    conv = jax.lax.conv_general_dilated(
        pixel_values.astype(jnp.float32), params["patch_w"].astype(jnp.float32),
        window_strides=(patch_size, patch_size), padding="VALID",
        dimension_numbers=("NCHW", "OIHW", "NCHW"),
        precision=jax.lax.Precision.HIGHEST)
    conv = conv + params["patch_b"].astype(jnp.float32).reshape(1, -1, 1, 1)
    B, D, Hp, Wp = conv.shape
    patch_embeds = conv.reshape(B, D, Hp * Wp).transpose(0, 2, 1)
    cls = jnp.broadcast_to(params["class_embedding"].astype(jnp.float32), (B, 1, D))
    emb = jnp.concatenate([cls, patch_embeds], axis=1)
    pos = params["position_embedding"].astype(jnp.float32)
    src_grid = int(round(math.sqrt(pos.shape[1] - 1)))
    pos_full = jnp.concatenate(
        [pos[:, :1, :], _get_pos_embed(pos[:, 1:, :], Hp, Wp, src_grid)[None]],
        axis=1)
    return emb + pos_full


# ----------------------------------------------------------------------------
if __name__ == "__main__":
    # Small synthetic config: image_size=16, patch_size=4, hidden_size=32
    image_size, patch_size, hidden_size = 16, 4, 32
    batch, channels = 2, 3
    num_patches = (image_size // patch_size) ** 2
    num_positions = num_patches + 1

    key = jax.random.PRNGKey(0)
    k_px, k_w, k_b, k_cls, k_pos = jax.random.split(key, 5)

    pixel_values = jax.random.normal(
        k_px, (batch, channels, image_size, image_size), dtype=jnp.float32)

    params = {
        "patch_w": jax.random.normal(
            k_w, (hidden_size, channels, patch_size, patch_size),
            dtype=jnp.float32) * 0.05,
        "patch_b": jax.random.normal(k_b, (hidden_size,), dtype=jnp.float32) * 0.05,
        "class_embedding": jax.random.normal(
            k_cls, (1, 1, hidden_size), dtype=jnp.float32),
        "position_embedding": jax.random.normal(
            k_pos, (1, num_positions, hidden_size), dtype=jnp.float32),
    }

    fwd = jax.jit(partial(intern_vision_embeddings, patch_size=patch_size))
    out = jax.block_until_ready(fwd(pixel_values, params))

    ref = reference_forward(pixel_values, params, patch_size=patch_size)
    assert out.shape == (batch, num_positions, hidden_size), out.shape
    # Tolerance accounts for MXU default-precision f32 matmul in the kernel.
    assert jnp.allclose(out.astype(jnp.float32), ref, rtol=1e-2, atol=1e-2), \
        "mismatch vs reference"

    print("KERNEL_OK")
</pallas_src>

<mosaic_0001>
module attributes {stable_mosaic.version = 11 : i64} {
  func.func @_patch_embed_kernel(%arg0: i32, %arg1: i32, %arg2: i32, %arg3: memref<1x17x128xf32, #tpu.memory_space<vmem>>, %arg4: memref<128x32xf32, #tpu.memory_space<vmem>>, %arg5: memref<17x32xf32, #tpu.memory_space<vmem>>, %arg6: memref<1x17x32xf32, #tpu.memory_space<vmem>>) attributes {dimension_semantics = [#tpu.dimension_semantics<parallel>, #tpu.dimension_semantics<parallel>, #tpu.dimension_semantics<parallel>], iteration_bounds = array<i64: 1, 1, 2>, scalar_prefetch = 0 : i64, scratch_operands = 0 : i64, tpu.core_type = #tpu.core_type<tc>, window_params = [{transform_indices = @transform_0, window_bounds = array<i64: 1, 17, 128>}, {transform_indices = @transform_1, window_bounds = array<i64: 128, 32>}, {transform_indices = @transform_2, window_bounds = array<i64: 17, 32>}, {transform_indices = @transform_3, window_bounds = array<i64: 1, 17, 32>}]} {
    %c0 = arith.constant 0 : index
    %c0_0 = arith.constant 0 : index
    %c0_1 = arith.constant 0 : index
    %0 = vector.load %arg3[%c0, %c0_0, %c0_1] : memref<1x17x128xf32, #tpu.memory_space<vmem>>, vector<1x17x128xf32>
    %1 = vector.shape_cast %0 : vector<1x17x128xf32> to vector<17x128xf32>
    %c0_2 = arith.constant 0 : index
    %c0_3 = arith.constant 0 : index
    %2 = vector.load %arg4[%c0_2, %c0_3] : memref<128x32xf32, #tpu.memory_space<vmem>>, vector<128x32xf32>
    %cst = arith.constant dense<0.000000e+00> : vector<17x32xf32>
    %3 = tpu.matmul %1, %2, %cst {dimension_numbers = #tpu.dot_dimension_numbers<[1], [0], [0], [1], [0, 0, 1, 1], [], []>} : vector<17x128xf32>, vector<128x32xf32>, vector<17x32xf32> -> vector<17x32xf32>
    %c0_4 = arith.constant 0 : index
    %c0_5 = arith.constant 0 : index
    %4 = vector.load %arg5[%c0_4, %c0_5] : memref<17x32xf32, #tpu.memory_space<vmem>>, vector<17x32xf32>
    %5 = arith.addf %3, %4 : vector<17x32xf32>
    %c0_6 = arith.constant 0 : index
    %c0_7 = arith.constant 0 : index
    %c0_8 = arith.constant 0 : index
    %6 = vector.load %arg6[%c0_6, %c0_7, %c0_8] : memref<1x17x32xf32, #tpu.memory_space<vmem>>, vector<1x17x32xf32>
    %7 = vector.shape_cast %6 : vector<1x17x32xf32> to vector<17x32xf32>
    %8 = vector.shape_cast %5 : vector<17x32xf32> to vector<1x17x32xf32>
    tpu.vector_store %arg6[%c0_6, %c0_7, %c0_8], %8 {strides = array<i32>} : memref<1x17x32xf32, #tpu.memory_space<vmem>>, vector<1x17x32xf32>,
    return
  }
  func.func @transform_0(%arg0: i32, %arg1: i32, %arg2: i32) -> (i32, i32, i32) {
    %c0_i32 = arith.constant 0 : i32
    %c0_i32_0 = arith.constant 0 : i32
    return %arg2, %arg1, %c0_i32 : i32, i32, i32
  }
  func.func @transform_1(%arg0: i32, %arg1: i32, %arg2: i32) -> (i32, i32) {
    %c0_i32 = arith.constant 0 : i32
    %c0_i32_0 = arith.constant 0 : i32
    return %c0_i32, %arg0 : i32, i32
  }
  func.func @transform_2(%arg0: i32, %arg1: i32, %arg2: i32) -> (i32, i32) {
    %c0_i32 = arith.constant 0 : i32
    return %arg1, %arg0 : i32, i32
  }
  func.func @transform_3(%arg0: i32, %arg1: i32, %arg2: i32) -> (i32, i32, i32) {
    %c0_i32 = arith.constant 0 : i32
    return %arg2, %arg1, %arg0 : i32, i32, i32
  }
}

</mosaic_0001>

<bundles_post_ra>
// kernel: intern_vision_embeddings.1
= control target key start
LH: loop header
LB: loop body
LE: loop exit
PB: predicated region body
PF: predicated region fallthrough
CT: control target
= control target key end

     0   :  { %s701_s12 = smov 0   ;;  %s703_s13 = smov 0   ;;  %s798_s0 = inlined_call_operand.vmem [shape: f32[2,17,128], index: 0, kind: input, shape index: {}]   ;;  %s799_s1 = inlined_call_operand.vmem [shape: f32[128,32], index: 1, kind: input, shape index: {}]   ;;  %s800_s2 = inlined_call_operand.vmem [shape: f32[17,32], index: 2, kind: input, shape index: {}]   ;;  %s801_s3 = inlined_call_operand.vmem [shape: f32[2,17,32], index: 3, kind: output, shape index: {}]  }
   0x1   :  { %s705_s14 = smov 0  }
   0x2 LB: > { %s25_s15 = sadd.s32 1, %s672_s13  ;;  %p521_p0 = scmp.ge.s32.totalorder %s676_s14, 1  ;;  %s676_s14 = sphi %s705_s14, %s13_s14   ;;  %s672_s13 = sphi %s703_s13, %s803_s13   ;;  %s668_s12 = sphi %s701_s12, %s802_s12  }
   0x3   : > { %p26_p1 = scmp.ge.s32.totalorder %s25_s15, 2  ;;  %p192_p2 = scmp.lt.s32.totalorder %s676_s14, 3 }
   0x5   : > { %s805_s15 = smov (%p26_p1, %s25_s15), 0  ;;  %p193_p3 = pnand %p521_p0, %p192_p2 }
   0x6   : > { %v278_v0 = vld [vmem:[%s799_s1] sm:$0xff] (!%p193_p3)  ;;  %v279_v1 = vld [vmem:[%s799_s1 + $0x8] sm:$0xff] (!%p193_p3)  ;;  %v280_v2 = vld [vmem:[%s799_s1 + $0x10] sm:$0xff] (!%p193_p3)  ;;  %v678_v3 = vmov (!%p193_p3), 0.0|0.0   ;;  %vm679_vm0 = vmmov (!%p193_p3), 0   ;;  %v680_v6 = vmov (!%p193_p3), 0.0  }
   0x7   : > { %196 = sbr.rel (%p193_p3) target bundleno = 259 (0x103), region = 32  ;;  %610 = vmatprep.subr.bf16.mxu1 (!%p193_p3), %v678_v3  ;;  %v587_v4 = vpack.c.bf16 (!%p193_p3), %v279_v1, %v278_v0  ;;  %586 = vmatprep.subr.bf16.mxu0 (!%p193_p3), %v678_v3  ;;  %v281_v5 = vld [vmem:[%s799_s1 + $0x18] sm:$0xff] (!%p193_p3)  ;;  %v282_v8 = vld [vmem:[%s799_s1 + $0x20] sm:$0xff] (!%p193_p3)  ;;  %v283_v9 = vld [vmem:[%s799_s1 + $0x28] sm:$0xff] (!%p193_p3)  ;;  %p240_p4 = scmp.lt.s32.totalorder (!%p193_p3), %s668_s12, 1  ;;  %vm377_vm1 = vcmask (!%p193_p3), 261120  }
   0x8   : > { %580 = vmatprep.mubr.msk.f32.mxu1 (!%p193_p3), %vm679_vm0, %v680_v6  ;;  %577 = vmatprep.mubr.msk.f32.mxu0 (!%p193_p3), %vm679_vm0, %v680_v6  ;;  %v590_v7 = vpack.c.bf16 (!%p193_p3), %v281_v5, %v280_v2  ;;  %v593_v10 = vpack.c.bf16 (!%p193_p3), %v283_v9, %v282_v8  ;;  %v284_v11 = vld [vmem:[%s799_s1 + $0x30] sm:$0xff] (!%p193_p3)  ;;  %v285_v12 = vld [vmem:[%s799_s1 + $0x38] sm:$0xff] (!%p193_p3)  ;;  %v286_v14 = vld [vmem:[%s799_s1 + $0x40] sm:$0xff] (!%p193_p3)  ;;  %vm380_vm2 = vcmask (!%p193_p3), 253952  }
   0x9   : > { %618 = vmatpush3.bf16.msra.mxu1 (!%p193_p3), %v587_v4  ;;  %588 = vmatpush3.bf16.msra.mxu0 (!%p193_p3), %v587_v4  ;;  %v596_v13 = vpack.c.bf16 (!%p193_p3), %v285_v12, %v284_v11  ;;  %v287_v15 = vld [vmem:[%s799_s1 + $0x48] sm:$0xff] (!%p193_p3)  ;;  %v288_v17 = vld [vmem:[%s799_s1 + $0x50] sm:$0xff] (!%p193_p3)  ;;  %v289_v18 = vld [vmem:[%s799_s1 + $0x58] sm:$0xff] (!%p193_p3) }
   0xa   : > { %611 = vmatprep.subr.bf16.mxu1 (!%p193_p3), %v678_v3  ;;  %589 = vmatprep.subr.bf16.mxu0 (!%p193_p3), %v678_v3  ;;  %v599_v16 = vpack.c.bf16 (!%p193_p3), %v287_v15, %v286_v14  ;;  %v602_v19 = vpack.c.bf16 (!%p193_p3), %v289_v18, %v288_v17  ;;  %v290_v20 = vld [vmem:[%s799_s1 + $0x60] sm:$0xff] (!%p193_p3)  ;;  %v291_v21 = vld [vmem:[%s799_s1 + $0x68] sm:$0xff] (!%p193_p3)  ;;  %v292_v23 = vld [vmem:[%s799_s1 + $0x70] sm:$0xff] (!%p193_p3) }
   0xb   : > { %v605_v22 = vpack.c.bf16 (!%p193_p3), %v291_v21, %v290_v20  ;;  %v293_v24 = vld [vmem:[%s799_s1 + $0x78] sm:$0xff] (!%p193_p3)  ;;  %v295_v29 = vld [vmem:[%s800_s2 + $0x8] sm:$0xff] (!%p193_p3)  ;;  %v294_v30 = vld [vmem:[%s800_s2] sm:$0xff] (!%p193_p3) }
   0xc   : > { %v608_v25 = vpack.c.bf16 (!%p193_p3), %v293_v24, %v292_v23  ;;  %v296_v37 = vld [vmem:[%s800_s2 + $0x10] sm:$0x1] (!%p193_p3) }
   0xd   : > { %619 = vmatpush3.bf16.msra.mxu1 (!%p193_p3), %v590_v7  ;;  %591 = vmatpush3.bf16.msra.mxu0 (!%p193_p3), %v590_v7 }
   0xe   : > { %612 = vmatprep.subr.bf16.mxu1 %v678_v3  ;;  %592 = vmatprep.subr.bf16.mxu0 %v678_v3  ;;  %s807_s12 = smov (!%p240_p4, %s668_s12), 1 }
   0xf   : > { %s626_s25 = smul.u32 24, %s807_s12 }
  0x11   : > { %620 = vmatpush3.bf16.msra.mxu1 %v593_v10  ;;  %594 = vmatpush3.bf16.msra.mxu0 %v593_v10  ;;  %s247_s28 = scalar_lea.vmem %s798_s0, %s626_s25  ;;  %s273_s7 = scalar_lea.vmem %s801_s3, %s626_s25 }
  0x12   : > { %613 = vmatprep.subr.bf16.mxu1 %v678_v3  ;;  %595 = vmatprep.subr.bf16.mxu0 %v678_v3  ;;  %v276_v26 = vld [vmem:[%s247_s28 + $0x8] sm:$0xff]  ;;  %v275_v27 = vld [vmem:[%s247_s28] sm:$0xff]  ;;  %v277_v28 = vld [vmem:[%s247_s28 + $0x10] sm:$0x1] }
  0x15   : > { %621 = vmatpush3.bf16.msra.mxu1 %v596_v13  ;;  %597 = vmatpush3.bf16.msra.mxu0 %v596_v13 }
  0x16   : > { %614 = vmatprep.subr.bf16.mxu1 %v678_v3  ;;  %598 = vmatprep.subr.bf16.mxu0 %v678_v3 }
  0x19   : > { %622 = vmatpush3.bf16.msra.mxu1 %v599_v16  ;;  %600 = vmatpush3.bf16.msra.mxu0 %v599_v16 }
  0x1a   : > { %615 = vmatprep.subr.bf16.mxu1 %v678_v3  ;;  %601 = vmatprep.subr.bf16.mxu0 %v678_v3 }
  0x1d   : > { %623 = vmatpush3.bf16.msra.mxu1 %v602_v19  ;;  %603 = vmatpush3.bf16.msra.mxu0 %v602_v19 }
  0x1e   : > { %616 = vmatprep.subr.bf16.mxu1 %v678_v3  ;;  %604 = vmatprep.subr.bf16.mxu0 %v678_v3 }
  0x21   : > { %624 = vmatpush3.bf16.msra.mxu1 %v605_v22  ;;  %606 = vmatpush3.bf16.msra.mxu0 %v605_v22 }
  0x22   : > { %617 = vmatprep.subr.bf16.mxu1 %v678_v3  ;;  %607 = vmatprep.subr.bf16.mxu0 %v678_v3 }
  0x25   : > { %625 = vmatpush3.bf16.msra.mxu1 %v608_v25  ;;  %609 = vmatpush3.bf16.msra.mxu0 %v608_v25 }
  0x28   : > { %581 = vmatmul.mubr.f32.vlgmr.msra.gmra.mrb[0].mxu1 %v276_v26  ;;  %578 = vmatmul.mubr.f32.vlgmr.msra.gmra.mrb[0].mxu0 %v275_v27 }
  0x29   : > { %583 = vmatprep.mubr.msk.f32.mxu1 %vm679_vm0, %v680_v6 }
  0x2c   : > { %584 = vmatmul.mubr.f32.gmra.mrb[2].mxu1 %v277_v28 }
  0xfb   : > { %v368_v31 = vpop.f32.mrb[0].mxu1  ;;  %v363_v32 = vpop.f32.mrb[0].mxu0 }
  0xfc   : > { %v369_v33 = vadd.f32 %v368_v31, %v295_v29  ;;  %v582_v34 = vpop.f32.mrb[1].mxu1  ;;  %v364_v35 = vadd.f32 %v363_v32, %v294_v30  ;;  %v579_v36 = vpop.f32.mrb[1].mxu0 }
  0xfe   : > { %379 = vst.msk [vmem:[%s273_s7 + $0x8] sm:$0xff] %vm377_vm1, %v369_v33  ;;  %378 = vst.msk [vmem:[%s273_s7] sm:$0xff] %vm377_vm1, %v364_v35 }
  0xff   : > { %v373_v38 = vpop.f32.mrb[2].mxu1 }
 0x100   : > { %v374_v39 = vadd.f32 %v373_v38, %v296_v37  ;;  %v585_v40 = vpop.f32.mrb[3].mxu1 }
 0x102   : > { %381 = vst.msk [vmem:[%s273_s7 + $0x10] sm:$0x1] %vm380_vm2, %v374_v39 }
 0x103 PF: > { %s13_s14 = sadd.s32 1, %s676_s14   ;;  %s802_s12 = smov %s672_s13 }
 0x104   : > { %p10_p5 = scmp.ge.s32.totalorder %s13_s14, 4   ;;  %s803_s13 = smov %s805_s15 }
 0x106   :  { %12 = sbr.rel (!%p10_p5) target bundleno = 2 (0x2), region = 68 }

</bundles_post_ra>
